<compile_context>
chip_gen: v6e
topology: v6e:2x2x1
jax: 0.10.0
libtpu: 0.0.40
codegen_flags: <defaults>
</compile_context>

<pallas_src>
import math
import functools

import jax
import jax.numpy as jnp
from jax.experimental import pallas as pl
from jax.experimental.pallas import tpu as pltpu


# Compat: newest JAX exposes pltpu.CompilerParams; slightly older releases call
# it TPUCompilerParams.  Both accept the kwargs used below.
_CompilerParamsCls = getattr(pltpu, "CompilerParams", None) or getattr(
    pltpu, "TPUCompilerParams"
)


def make_pe_table(max_len, d_model, dtype=jnp.float32):
    """Sinusoidal PE buffer, exactly as in the PyTorch module's __init__."""
    position = jnp.arange(max_len, dtype=jnp.float32)[:, None]            # [L,1]
    div_term = jnp.exp(
        jnp.arange(0, d_model, 2, dtype=jnp.float32)
        * (-math.log(10000.0) / d_model)
    )                                                                     # [D/2]
    angles = position * div_term                                          # [L,D/2]
    pe = jnp.zeros((max_len, 1, d_model), dtype=jnp.float32)
    pe = pe.at[:, 0, 0::2].set(jnp.sin(angles))
    pe = pe.at[:, 0, 1::2].set(jnp.cos(angles))
    return pe.astype(dtype)


# ----------------------------- kernels ---------------------------------------
# Block shapes (lane-dense 2-D views):
#   x / out / bits : (ts, B*D)   last dim is B*D -> large multiple of 128
#   pe             : (ts, D)     broadcast over batch inside the kernel

def _broadcast_pe(pe_blk, batch, target_shape):
    # x2[s, b*D + d] needs pe[s, d] -> tile the PE row `batch` times along lanes.
    ts, d = pe_blk.shape
    return jnp.broadcast_to(pe_blk[:, None, :], (ts, batch, d)).reshape(target_shape)


def _pe_add_kernel(x_ref, pe_ref, o_ref, *, batch):
    pe_b = _broadcast_pe(pe_ref[...], batch, x_ref.shape)
    o_ref[...] = (x_ref[...] + pe_b).astype(o_ref.dtype)


def _pe_add_dropout_kernel(x_ref, pe_ref, bits_ref, o_ref, *, batch, p_drop):
    pe_b = _broadcast_pe(pe_ref[...], batch, x_ref.shape)
    y = x_ref[...] + pe_b
    keep_prob = 1.0 - p_drop
    # Clamp so the threshold never wraps to 0 for tiny-but-nonzero p.
    threshold = jnp.uint32(min(int(round(keep_prob * 4294967296.0)), 4294967295))
    keep = bits_ref[...] < threshold
    scale = 1.0 / keep_prob                       # inverted dropout
    o_ref[...] = jnp.where(keep, y * scale, jnp.zeros_like(y)).astype(o_ref.dtype)


# ----------------------------- wrapper ----------------------------------------

def _pick_seq_tile(S, row_bytes, target_block_bytes=1 << 20):
    """~1 MiB per x/out block: large enough to approach the HBM roofline,
    small enough that double-buffered x/out/bits blocks fit v5e's 16 MiB
    scoped-VMEM default and v7x's 64 MiB physical VMEM with headroom."""
    ts = max(1, target_block_bytes // row_bytes)
    if ts >= S:
        return S                      # full-extent block is always layout-legal
    return max(8, (ts // 8) * 8)      # sublane-aligned tile


def positional_encoding_forward(x, pe, *, p_drop=0.1, training=False, seed=0,
                                seq_tile=None):
    """x: [S, B, D]; pe: [max_len, 1, D] (from make_pe_table)."""
    S, B, D = x.shape
    BD = B * D
    out_dtype = x.dtype

    # Lane-dense 2-D views (wrapper-side layout plumbing only).
    x2 = x.reshape(S, BD)
    pe2 = pe[:S].reshape(S, D).astype(out_dtype)   # cast once: halves PE traffic for bf16

    row_bytes = BD * jnp.dtype(out_dtype).itemsize
    ts = _pick_seq_tile(S, row_bytes) if seq_tile is None else seq_tile
    if ts >= S:
        ts = S
    else:
        ts = max(8, (ts // 8) * 8)
    grid = (pl.cdiv(S, ts),)

    cparams = _CompilerParamsCls(
        dimension_semantics=("parallel",),         # shard seq tiles across v7x's 2 TCs
        vmem_limit_bytes=32 * 1024 * 1024,         # explicit, safe on v5e/v6e/v7x
    )

    x_spec = pl.BlockSpec((ts, BD), lambda i: (i, 0))
    pe_spec = pl.BlockSpec((ts, D), lambda i: (i, 0))
    out_spec = pl.BlockSpec((ts, BD), lambda i: (i, 0))
    out_shape = jax.ShapeDtypeStruct((S, BD), out_dtype)

    if (not training) or p_drop == 0.0:
        y2 = pl.pallas_call(
            functools.partial(_pe_add_kernel, batch=B),
            out_shape=out_shape,
            grid=grid,
            in_specs=[x_spec, pe_spec],
            out_specs=out_spec,
            compiler_params=cparams,
        )(x2, pe2)
        return y2.reshape(S, B, D)

    if p_drop >= 1.0:                              # degenerate: drop everything
        return jnp.zeros_like(x)

    # Portable PRNG: bits generated once in the wrapper (deterministic given
    # `seed`), streamed through the kernel.  Avoids pltpu.prng_* which only
    # lowers on real TPU and broke the previous interpret/CPU check.
    bits = jax.random.bits(jax.random.PRNGKey(seed), (S, BD), dtype=jnp.uint32)
    bits_spec = pl.BlockSpec((ts, BD), lambda i: (i, 0))

    y2 = pl.pallas_call(
        functools.partial(_pe_add_dropout_kernel, batch=B, p_drop=float(p_drop)),
        out_shape=out_shape,
        grid=grid,
        in_specs=[x_spec, pe_spec, bits_spec],
        out_specs=out_spec,
        compiler_params=cparams,
    )(x2, pe2, bits)
    return y2.reshape(S, B, D)


# ------------------------------- main ------------------------------------------

if __name__ == "__main__":
    d_model = 32
    seq_len = 8
    batch = 4          # B*D = 128 -> fully lane-dense blocks for this example
    max_len = 128      # module default is 5000; small synthetic table here

    key = jax.random.PRNGKey(0)
    x = jax.random.normal(key, (seq_len, batch, d_model), dtype=jnp.float32)
    pe = make_pe_table(max_len, d_model)
    y_ref = x + pe[:seq_len]

    # eval mode: dropout is identity -> exact match against pure-JAX reference
    y_eval = positional_encoding_forward(x, pe, p_drop=0.1, training=False)
    y_eval = jax.block_until_ready(y_eval)
    assert y_eval.shape == x.shape
    assert jnp.allclose(y_eval, y_ref, atol=1e-6), "eval-mode mismatch"

    # bf16 input: PE cast to x.dtype in wrapper, store casts to output dtype
    xb = x.astype(jnp.bfloat16)
    yb = positional_encoding_forward(xb, pe, p_drop=0.1, training=False)
    yb = jax.block_until_ready(yb)
    yb_ref = xb + pe[:seq_len].astype(jnp.bfloat16)
    assert yb.dtype == jnp.bfloat16
    assert jnp.allclose(yb.astype(jnp.float32), yb_ref.astype(jnp.float32), atol=1e-2)

    # train mode: inverted dropout (deterministic given seed)
    y_train = positional_encoding_forward(x, pe, p_drop=0.1, training=True, seed=0)
    y_train = jax.block_until_ready(y_train)
    assert y_train.shape == x.shape
    kept = y_train != 0.0
    assert jnp.allclose(jnp.where(kept, y_train, 0.0),
                        jnp.where(kept, y_ref / 0.9, 0.0), atol=1e-5)

    print("KERNEL_OK")
</pallas_src>

<mosaic_0001>
module attributes {stable_mosaic.version = 11 : i64} {
  func.func @_pe_add_kernel(%arg0: i32, %arg1: memref<8x128xf32, #tpu.memory_space<vmem>>, %arg2: memref<8x32xf32, #tpu.memory_space<vmem>>, %arg3: memref<8x128xf32, #tpu.memory_space<vmem>>) attributes {dimension_semantics = [#tpu.dimension_semantics<parallel>], iteration_bounds = array<i64: 1>, scalar_prefetch = 0 : i64, scratch_operands = 0 : i64, tpu.core_type = #tpu.core_type<tc>, window_params = [{transform_indices = @transform_0, window_bounds = array<i64: 8, 128>}, {transform_indices = @transform_1, window_bounds = array<i64: 8, 32>}, {transform_indices = @transform_2, window_bounds = array<i64: 8, 128>}]} {
    %c0 = arith.constant 0 : index
    %c0_0 = arith.constant 0 : index
    %0 = vector.load %arg2[%c0, %c0_0] : memref<8x32xf32, #tpu.memory_space<vmem>>, vector<8x32xf32>
    %1 = vector.shape_cast %0 : vector<8x32xf32> to vector<8x1x32xf32>
    %2 = vector.shape_cast %1 : vector<8x1x32xf32> to vector<8x1x32xf32>
    %3 = vector.broadcast %2 : vector<8x1x32xf32> to vector<8x4x32xf32>
    %4 = vector.shape_cast %3 : vector<8x4x32xf32> to vector<8x128xf32>
    %c0_1 = arith.constant 0 : index
    %c0_2 = arith.constant 0 : index
    %5 = vector.load %arg1[%c0_1, %c0_2] : memref<8x128xf32, #tpu.memory_space<vmem>>, vector<8x128xf32>
    %6 = arith.addf %5, %4 : vector<8x128xf32>
    %c0_3 = arith.constant 0 : index
    %c0_4 = arith.constant 0 : index
    %7 = vector.load %arg3[%c0_3, %c0_4] : memref<8x128xf32, #tpu.memory_space<vmem>>, vector<8x128xf32>
    tpu.vector_store %arg3[%c0_3, %c0_4], %6 {strides = array<i32>} : memref<8x128xf32, #tpu.memory_space<vmem>>, vector<8x128xf32>,
    return
  }
  func.func @transform_0(%arg0: i32) -> (i32, i32) {
    %c0_i32 = arith.constant 0 : i32
    %c0_i32_0 = arith.constant 0 : i32
    return %arg0, %c0_i32 : i32, i32
  }
  func.func @transform_1(%arg0: i32) -> (i32, i32) {
    %c0_i32 = arith.constant 0 : i32
    %c0_i32_0 = arith.constant 0 : i32
    return %arg0, %c0_i32 : i32, i32
  }
  func.func @transform_2(%arg0: i32) -> (i32, i32) {
    %c0_i32 = arith.constant 0 : i32
    %c0_i32_0 = arith.constant 0 : i32
    return %arg0, %c0_i32 : i32, i32
  }
}

</mosaic_0001>

<bundles_post_ra>
// kernel: tpu_custom_call.1
= control target key start
LH: loop header
LB: loop body
LE: loop exit
PB: predicated region body
PF: predicated region fallthrough
CT: control target
= control target key end

     0   :  { %7 = vsyncpa [#allocation3], 0  ;;  %s341_s0 = inlined_call_operand.hbm [shape: f32[8,128], index: 0, kind: input, shape index: {}]   ;;  %s342_s1 = inlined_call_operand.hbm [shape: f32[8,32], index: 1, kind: input, shape index: {}]   ;;  %s343_s2 = inlined_call_operand.hbm [shape: f32[8,128], index: 2, kind: output, shape index: {}]  }
   0x1   :  { %8 = vsyncpa [#allocation6], 0 }
   0x2   :  { %9 = vsyncpa [#allocation4], 0  ;;  %s308_s9 = smov [#allocation2]   ;;  %s309_s11 = smov [#allocation5]  }
   0x3   :  { %s16_s10 = sshll.u32 %s308_s9, 4  ;;  %s26_s12 = sshll.u32 %s309_s11, 4  ;;  %s17_s10 = int_to_ptr.vmem [resolvable:$true] %s16_s10  ;;  %s27_s12 = int_to_ptr.vmem [resolvable:$true] %s26_s12 }
   0x4   :  { %s250_s13 = scalar_lea.vmem %s17_s10, 128  ;;  %p255_p1 = scmp.lt.s32.totalorder %s17_s10, %s17_s10 }
   0x5   :  { %p251_p0 = scmp.ne.s32.totalorder %s17_s10, %s250_s13  ;;  %p256_p2 = scmp.lt.s32.totalorder %s250_s13, %s250_s13 }
   0x7   :  { %p257_p3 = por %p256_p2, %p255_p1 }
   0x9   :  { %p258_p4 = pnand %p257_p3, %p251_p0 }
   0xb   :  { %261 = shalt.err (!%p258_p4)
}
   0xc   :  { %19 = dma.hbm_to_vmem [thread:$0]  %s341_s0, 128, %s17_s10, [#allocation3]  }
   0xd   :  { %s270_s16 = scalar_lea.vmem %s27_s12, 128  ;;  %p275_p6 = scmp.lt.s32.totalorder %s27_s12, %s27_s12 }
   0xe   :  { %p271_p5 = scmp.ne.s32.totalorder %s27_s12, %s270_s16  ;;  %p276_p7 = scmp.lt.s32.totalorder %s270_s16, %s270_s16 }
  0x10   :  { %p277_p8 = por %p276_p7, %p275_p6 }
  0x12   :  { %p278_p9 = pnand %p277_p8, %p271_p5 }
  0x14   :  { %281 = shalt.err (!%p278_p9)
}
  0x15   :  { %29 = dma.hbm_to_vmem [thread:$0]  %s342_s1, 128, %s27_s12, [#allocation6]  }
  0x16   :  { %302 = dma.done.wait [#allocation3], 128  }
  0x17   :  { %303 = vsyncadd [#allocation3], 4294967168 }
  0x18   :  { %304 = dma.done.wait [#allocation6], 128  }
  0x19   :  { %305 = vsyncadd [#allocation6], 4294967168  ;;  %v42_v0 = vlaneseq  ;;  %v310_v1 = vmov 1966171168   ;;  %v36_v6 = vld [vmem:[#allocation5] sm:$0xff]  ;;  %s313_s0 = smov 32  }
  0x1a   :  { %v40_v2 = vunpack.c.l.s4 %v310_v1  ;;  %v311_v7 = vmov 1983009808   ;;  %v38_v9 = vcombine.high %v36_v6, %v36_v6  ;;  %v312_v16 = vmov 1934713408   ;;  %s314_s1 = smov 96   ;;  %s315_s19 = smov 64  }
  0x1b   :  { %v43_v3 = vshrl.u32 %v42_v0, 7  ;;  %v129_v8 = vunpack.c.l.s4 %v311_v7  ;;  %v162_v17 = vunpack.c.l.s4 %v312_v16  ;;  %vm207_vm0 = vcmask 261120   ;;  %v213_v61 = vld [vmem:[#allocation2] sm:$0xff]  ;;  %s316_s20 = smov [#allocation7]  }
  0x1c   :  { %v41_v4 = vunpack.c.0.s8 %v40_v2  ;;  %vm209_vm1 = vcmask 523264   ;;  %vm211_vm2 = vcmask 785408   ;;  %s222_s21 = sshll.u32 %s316_s20, 4  ;;  %s223_s21 = int_to_ptr.vmem [resolvable:$true] %s222_s21 }
  0x1d   :  { %v89_v11 = vsub.s32 0, %v43_v3  ;;  %v130_v15 = vunpack.c.0.s8 %v129_v8  ;;  %v163_v30 = vunpack.c.0.s8 %v162_v17  ;;  %s282_s22 = scalar_lea.vmem %s223_s21, 128  ;;  %p287_p11 = scmp.lt.s32.totalorder %s223_s21, %s223_s21 }
  0x1e   :  { %v44_v5 = vsub.s32 %v41_v4, %v43_v3  ;;  %p283_p10 = scmp.ne.s32.totalorder %s223_s21, %s282_s22  ;;  %p288_p12 = scmp.lt.s32.totalorder %s282_s22, %s282_s22 }
  0x1f   :  { %v133_v29 = vsub.s32 %v130_v15, %v43_v3  ;;  %v166_v43 = vsub.s32 %v163_v30, %v43_v3 }
  0x20   :  { %v45_v10 = vrot.slane %v36_v6, %v44_v5  ;;  %v52_v12 = vrot.slane %v38_v9, %v44_v5  ;;  %p289_p13 = por %p288_p12, %p287_p11 }
  0x22   :  { %v53_v13 = vcombine.high %v45_v10, %v45_v10  ;;  %v61_v14 = vrot.slane %v45_v10, %v44_v5  ;;  %v54_v18 = vcombine.high %v52_v12, %v52_v12  ;;  %v68_v19 = vrot.slane %v52_v12, %v44_v5  ;;  %p290_p0 = pnand %p289_p13, %p283_p10 }
  0x24   :  { %v75_v20 = vrot.slane %v53_v13, %v44_v5  ;;  %v83_v21 = vcombine.high %v61_v14, %v61_v14  ;;  %v90_v22 = vrot.slane %v61_v14, %v89_v11  ;;  %v82_v23 = vrot.slane %v54_v18, %v44_v5 }
  0x25   :  { %v84_v24 = vcombine.high %v68_v19, %v68_v19  ;;  %v106_v28 = vrot.slane %v68_v19, %v89_v11 }
  0x26   :  { %v85_v25 = vcombine.high %v75_v20, %v75_v20  ;;  %v94_v26 = vrot.slane %v75_v20, %v89_v11  ;;  %v98_v27 = vrot.slane %v83_v21, %v89_v11  ;;  %v86_v31 = vcombine.high %v82_v23, %v82_v23 }
  0x27   :  { %v110_v33 = vrot.slane %v82_v23, %v89_v11  ;;  %v114_v34 = vrot.slane %v84_v24, %v89_v11 }
  0x28   :  { %v102_v32 = vrot.slane %v85_v25, %v89_v11  ;;  %v127_v35 = vcombine.low %v90_v22, %v98_v27  ;;  %v118_v36 = vrot.slane %v86_v31, %v89_v11 }
  0x29   :  { %v143_v38 = vcombine.low %v106_v28, %v114_v34 }
  0x2a   :  { %v135_v37 = vcombine.low %v94_v26, %v102_v32  ;;  %v134_v39 = vrot.slane %v127_v35, %v133_v29  ;;  %v151_v42 = vcombine.low %v110_v33, %v118_v36 }
  0x2b   :  { %v150_v41 = vrot.slane %v143_v38, %v133_v29 }
  0x2c   :  { %v142_v40 = vrot.slane %v135_v37, %v133_v29  ;;  %v158_v44 = vrot.slane %v151_v42, %v133_v29 }
  0x2e   :  { %v159_v45 = vcombine.low %v134_v39, %v142_v40  ;;  %v160_v46 = vcombine.high %v134_v39, %v142_v40  ;;  %v175_v48 = vcombine.low %v150_v41, %v158_v44  ;;  %v176_v50 = vcombine.high %v150_v41, %v158_v44 }
  0x30   :  { %v167_v47 = vrot.slane %v159_v45, %v166_v43  ;;  %v174_v49 = vrot.slane %v160_v46, %v166_v43  ;;  %v183_v51 = vrot.slane %v175_v48, %v166_v43  ;;  %v190_v52 = vrot.slane %v176_v50, %v166_v43 }
  0x32   :  { %v192_v53 = vcombine.high %v167_v47, %v183_v51  ;;  %v191_v54 = vcombine.low %v167_v47, %v183_v51  ;;  %v194_v55 = vcombine.high %v174_v49, %v190_v52  ;;  %v193_v56 = vcombine.low %v174_v49, %v190_v52 }
  0x34   :  { %196 = vrot.lane.b32.xlu0 %v192_v53, %s313_s0  ;;  %204 = vrot.lane.b32.xlu1 %v194_v55, %s314_s1 }
  0x38   :  { %200 = vrot.lane.b32.xlu0 %v193_v56, %s315_s19 }
  0xa6   :  { %v197_v57 = vpop.permute.xlu0 %196  ;;  %v205_v58 = vpop.permute.xlu1 %204 }
  0xa7   :  { %v208_v59 = vsel %vm207_vm0, %v191_v54, %v197_v57 }
  0xaa   :  { %v201_v60 = vpop.permute.xlu0 %200 }
  0xab   :  { %v210_v62 = vsel %vm209_vm1, %v208_v59, %v201_v60 }
  0xac   :  { %v212_v63 = vsel %vm211_vm2, %v210_v62, %v205_v58 }
  0xad   :  { %v214_v0 = vadd.f32 %v213_v61, %v212_v63 }
  0xaf   :  { %215 = vst [vmem:[#allocation7] sm:$0xff] %v214_v0 }
  0xb0   :  { %293 = shalt.err (!%p290_p0)
}
  0xb1   :  { %225 = dma.vmem_to_hbm [thread:$0]  %s223_s21, 128, %s343_s2, [#allocation4]  }
  0xb2   :  { %306 = dma.done.wait [#allocation4], 128  }
  0xb3   :  { %307 = vsyncadd [#allocation4], 4294967168 }
  0xb4   :  { %229 = vsyncpa [#allocation3], 1 }
  0xb5   :  { %230 = vsyncpa [#allocation6], 1 }
  0xb6   :  { %231 = vsyncpa [#allocation4], 1 }

</bundles_post_ra>
